<compile_context>
chip_gen: v7x
topology: tpu7x:2x2x1
jax: 0.10.0
libtpu: 0.0.40
codegen_flags: <defaults>
</compile_context>

<pallas_src>
import functools

import jax
import jax.numpy as jnp
from jax.experimental import pallas as pl
from jax.experimental.pallas import tpu as pltpu


def _round_up(x: int, m: int) -> int:
    return ((x + m - 1) // m) * m


def _vmem_limit(est: int) -> int:
    # Generous headroom over the estimated footprint, capped below v7x's
    # 64 MiB physical VMEM per TensorCore.
    return int(min(max(2 * est, 32 << 20), 56 << 20))


# ---------------------------------------------------------------------------
# Kernels
# ---------------------------------------------------------------------------

def _linear_kernel_fullk(x_ref, w_ref, b_ref, o_ref):
    # Whole reduction dim in one MXU pass; f32 accumulation; fused bias add.
    acc = jnp.dot(x_ref[...], w_ref[...], preferred_element_type=jnp.float32)
    o_ref[...] = (acc + b_ref[...].astype(jnp.float32)).astype(o_ref.dtype)


def _linear_kernel_ktiled(x_ref, w_ref, b_ref, o_ref, acc_ref):
    # K is the innermost ("arbitrary") grid axis; acc_ref persists across it.
    k = pl.program_id(2)

    @pl.when(k == 0)
    def _():
        acc_ref[...] = jnp.zeros_like(acc_ref)

    acc_ref[...] += jnp.dot(
        x_ref[...], w_ref[...], preferred_element_type=jnp.float32
    )

    @pl.when(k == pl.num_programs(2) - 1)
    def _():
        o_ref[...] = (
            acc_ref[...] + b_ref[...].astype(jnp.float32)
        ).astype(o_ref.dtype)


# ---------------------------------------------------------------------------
# Wrapper
# ---------------------------------------------------------------------------

@functools.partial(jax.jit, static_argnames=("tm", "tn", "tk"))
def linear_projector(img_patches, weight_t, bias, *, tm=None, tn=None, tk=None):
    """img_patches: (B, P, K); weight_t: (K, N); bias: (N,) -> (B, P, N)."""
    B, P, K = img_patches.shape
    Kw, N = weight_t.shape
    assert K == Kw, "weight_t must be (vision_dim, llm_dim)"
    M = B * P

    dtype = img_patches.dtype
    in_bytes = jnp.dtype(dtype).itemsize
    out_bytes = in_bytes
    b_bytes = jnp.dtype(bias.dtype).itemsize
    # Sublane packing: 16 rows/vreg for 16-bit dtypes, 8 for 32-bit.
    sub = 16 if in_bytes == 2 else 8

    # --- tile selection (static, derived from shapes at trace time) ---------
    if tm is None:
        tm = min(256, _round_up(M, sub))
        # Prefer >= 2 M-blocks so both v7x TensorCores get work.
        if _round_up(M, tm) // tm < 2 and M > sub:
            tm = max(sub, _round_up((M + 1) // 2, sub))
    if tn is None:
        tn = min(512, _round_up(N, 128))

    def fullk_bytes(tm_, tn_):
        # Double-buffered x / w / out tiles + bias tile.
        return (2 * (tm_ * K + K * tn_) * in_bytes
                + 2 * tm_ * tn_ * out_bytes
                + 2 * tn_ * b_bytes)

    budget = 40 << 20  # conservative working-set target (v7x: 64 MiB VMEM/TC)
    if tk is None and fullk_bytes(tm, tn) > budget:
        # Shrink the output tile first, then split K.
        while tn > 256 and fullk_bytes(tm, tn) > budget:
            tn //= 2
        while tm > sub and fullk_bytes(tm, tn) > budget:
            tm = max(sub, _round_up(tm // 2, sub))
        if fullk_bytes(tm, tn) > budget:
            fixed = 2 * tm * tn * out_bytes + 4 * tm * tn + 2 * tn * b_bytes
            tk = max(128,
                     ((budget - fixed) // (2 * in_bytes * (tm + tn))) // 128 * 128)

    M_pad = _round_up(M, tm)
    N_pad = _round_up(N, tn)

    # --- pad to tile multiples (trailing rows/cols would otherwise drop) ----
    x2d = img_patches.reshape(M, K)
    w2d = weight_t
    b2d = bias.reshape(1, N)
    if M_pad != M:
        x2d = jnp.pad(x2d, ((0, M_pad - M), (0, 0)))
    if N_pad != N:
        w2d = jnp.pad(w2d, ((0, 0), (0, N_pad - N)))
        b2d = jnp.pad(b2d, ((0, 0), (0, N_pad - N)))

    if tk is None:
        # ---------------- full-K single-pass path ----------------
        grid = (N_pad // tn, M_pad // tm)  # j (weight-resident) outer, i inner
        out2d = pl.pallas_call(
            _linear_kernel_fullk,
            out_shape=jax.ShapeDtypeStruct((M_pad, N_pad), dtype),
            grid_spec=pltpu.PrefetchScalarGridSpec(
                num_scalar_prefetch=0,
                grid=grid,
                in_specs=[
                    # x tile: full K, changes with inner axis i.
                    pl.BlockSpec((tm, K), lambda j, i: (i, 0)),
                    # weight tile: constant across i -> fetched once per j.
                    pl.BlockSpec((K, tn), lambda j, i: (0, j)),
                    # bias tile: same residency as the weight tile.
                    pl.BlockSpec((1, tn), lambda j, i: (0, j)),
                ],
                out_specs=pl.BlockSpec((tm, tn), lambda j, i: (i, j)),
            ),
            compiler_params=pltpu.CompilerParams(
                dimension_semantics=("parallel", "parallel"),
                vmem_limit_bytes=_vmem_limit(fullk_bytes(tm, tn)),
            ),
        )(x2d, w2d, b2d)
    else:
        # ---------------- K-tiled accumulator path ----------------
        tk = min(_round_up(tk, 128), _round_up(K, 128))
        K_pad = _round_up(K, tk)
        if K_pad != K:
            x2d = jnp.pad(x2d, ((0, 0), (0, K_pad - K)))
            w2d = jnp.pad(w2d, ((0, K_pad - K), (0, 0)))
        vmem_est = (2 * (tm * tk + tk * tn) * in_bytes
                    + 2 * tm * tn * out_bytes
                    + 4 * tm * tn          # f32 accumulator scratch
                    + 2 * tn * b_bytes)
        grid = (N_pad // tn, M_pad // tm, K_pad // tk)  # reduction axis last
        out2d = pl.pallas_call(
            _linear_kernel_ktiled,
            out_shape=jax.ShapeDtypeStruct((M_pad, N_pad), dtype),
            grid_spec=pltpu.PrefetchScalarGridSpec(
                num_scalar_prefetch=0,
                grid=grid,
                in_specs=[
                    pl.BlockSpec((tm, tk), lambda j, i, k: (i, k)),
                    pl.BlockSpec((tk, tn), lambda j, i, k: (k, j)),
                    pl.BlockSpec((1, tn), lambda j, i, k: (0, j)),
                ],
                out_specs=pl.BlockSpec((tm, tn), lambda j, i, k: (i, j)),
                scratch_shapes=[pltpu.VMEM((tm, tn), jnp.float32)],
            ),
            compiler_params=pltpu.CompilerParams(
                dimension_semantics=("parallel", "parallel", "arbitrary"),
                vmem_limit_bytes=_vmem_limit(vmem_est),
            ),
        )(x2d, w2d, b2d)

    return out2d[:M, :N].reshape(B, P, N)


if __name__ == "__main__":
    # Small shapes consistent with the module's forward: (B, num_patches, vision_dim)
    B, P = 2, 8
    vision_dim, llm_dim = 256, 128

    key = jax.random.PRNGKey(0)
    kx, kw, kb = jax.random.split(key, 3)

    img_patches = jax.random.normal(kx, (B, P, vision_dim), dtype=jnp.float32)

    # Deterministic nn.Linear-style init: U(-1/sqrt(in), 1/sqrt(in))
    bound = 1.0 / (vision_dim ** 0.5)
    weight = jax.random.uniform(
        kw, (llm_dim, vision_dim), minval=-bound, maxval=bound, dtype=jnp.float32
    )  # PyTorch stores (out, in); the kernel takes its transpose (K, N).
    bias = jax.random.uniform(
        kb, (llm_dim,), minval=-bound, maxval=bound, dtype=jnp.float32
    )

    ref = img_patches @ weight.T + bias

    # Default path: full-K single-pass kernel.
    out = jax.block_until_ready(linear_projector(img_patches, weight.T, bias))
    assert out.shape == (B, P, llm_dim)
    assert jnp.allclose(out, ref, atol=1e-4, rtol=1e-4)

    # Forced K-tiled path (exercised for correctness of the large-K fallback).
    out_kt = jax.block_until_ready(
        linear_projector(img_patches, weight.T, bias, tk=128)
    )
    assert jnp.allclose(out_kt, ref, atol=1e-4, rtol=1e-4)

    print("KERNEL_OK")
</pallas_src>

<mosaic_0001>
module attributes {stable_mosaic.version = 11 : i64} {
  func.func @_linear_kernel_fullk(%arg0: i32, %arg1: i32, %arg2: memref<8x256xf32, #tpu.memory_space<vmem>>, %arg3: memref<256x128xf32, #tpu.memory_space<vmem>>, %arg4: memref<1x128xf32, #tpu.memory_space<vmem>>, %arg5: memref<8x128xf32, #tpu.memory_space<vmem>>) attributes {dimension_semantics = [#tpu.dimension_semantics<parallel>, #tpu.dimension_semantics<parallel>], iteration_bounds = array<i64: 1, 2>, scalar_prefetch = 0 : i64, scratch_operands = 0 : i64, tpu.core_type = #tpu.core_type<tc>, window_params = [{transform_indices = @transform_0, window_bounds = array<i64: 8, 256>}, {transform_indices = @transform_1, window_bounds = array<i64: 256, 128>}, {transform_indices = @transform_2, window_bounds = array<i64: 1, 128>}, {transform_indices = @transform_3, window_bounds = array<i64: 8, 128>}]} {
    %c0 = arith.constant 0 : index
    %c0_0 = arith.constant 0 : index
    %0 = vector.load %arg2[%c0, %c0_0] : memref<8x256xf32, #tpu.memory_space<vmem>>, vector<8x256xf32>
    %c0_1 = arith.constant 0 : index
    %c0_2 = arith.constant 0 : index
    %1 = vector.load %arg3[%c0_1, %c0_2] : memref<256x128xf32, #tpu.memory_space<vmem>>, vector<256x128xf32>
    %cst = arith.constant dense<0.000000e+00> : vector<8x128xf32>
    %2 = tpu.matmul %0, %1, %cst {dimension_numbers = #tpu.dot_dimension_numbers<[1], [0], [0], [1], [0, 0, 1, 1], [], []>} : vector<8x256xf32>, vector<256x128xf32>, vector<8x128xf32> -> vector<8x128xf32>
    %c0_3 = arith.constant 0 : index
    %c0_4 = arith.constant 0 : index
    %3 = vector.load %arg4[%c0_3, %c0_4] : memref<1x128xf32, #tpu.memory_space<vmem>>, vector<1x128xf32>
    %4 = vector.broadcast %3 : vector<1x128xf32> to vector<8x128xf32>
    %5 = arith.addf %2, %4 : vector<8x128xf32>
    %c0_5 = arith.constant 0 : index
    %c0_6 = arith.constant 0 : index
    %6 = vector.load %arg5[%c0_5, %c0_6] : memref<8x128xf32, #tpu.memory_space<vmem>>, vector<8x128xf32>
    tpu.vector_store %arg5[%c0_5, %c0_6], %5 {strides = array<i32>} : memref<8x128xf32, #tpu.memory_space<vmem>>, vector<8x128xf32>,
    return
  }
  func.func @transform_0(%arg0: i32, %arg1: i32) -> (i32, i32) {
    %c0_i32 = arith.constant 0 : i32
    %c0_i32_0 = arith.constant 0 : i32
    return %arg1, %c0_i32 : i32, i32
  }
  func.func @transform_1(%arg0: i32, %arg1: i32) -> (i32, i32) {
    %c0_i32 = arith.constant 0 : i32
    %c0_i32_0 = arith.constant 0 : i32
    return %c0_i32, %arg0 : i32, i32
  }
  func.func @transform_2(%arg0: i32, %arg1: i32) -> (i32, i32) {
    %c0_i32 = arith.constant 0 : i32
    %c0_i32_0 = arith.constant 0 : i32
    return %c0_i32, %arg0 : i32, i32
  }
  func.func @transform_3(%arg0: i32, %arg1: i32) -> (i32, i32) {
    %c0_i32 = arith.constant 0 : i32
    return %arg1, %arg0 : i32, i32
  }
}

</mosaic_0001>

<bundles_post_ra>
// kernel: linear_projector.1
= control target key start
LH: loop header
LB: loop body
LE: loop exit
PB: predicated region body
PF: predicated region fallthrough
CT: control target
= control target key end

     0   :  { %8 = vsyncpa [#allocation3], 0  ;;  %s1021_s0 = inlined_call_operand.hbm [shape: f32[16,256], index: 0, kind: input, shape index: {}]   ;;  %s1022_s1 = inlined_call_operand.hbm [shape: f32[256,128], index: 1, kind: input, shape index: {}]   ;;  %s1023_s2 = inlined_call_operand.vmem [shape: f32[1,128], index: 2, kind: input, shape index: {}]   ;;  %s1024_s3 = inlined_call_operand.hbm [shape: f32[16,128], index: 3, kind: output, shape index: {}]  }
   0x1   :  { %10 = vsyncpa [#allocation3 + $0x1], 0 }
   0x2   :  { %11 = vsyncpa [#allocation6], 0 }
   0x3   :  { %12 = vsyncpa [#allocation4], 0 }
   0x4   :  { %14 = vsyncpa [#allocation4 + $0x1], 0  ;;  %s799_s12 = smov 0   ;;  %s801_s13 = smov 0  }
   0x5   :  { %s803_s14 = smov 0   ;;  %s805_s15 = smov 0  }
   0x6   :  { %s807_s16 = smov 0   ;;  %s809_s17 = smov 0  }
   0x7 LB: > { %s467_s18 = sadd.s32 4294967295, %s772_s17   ;;  %s468_s19 = sadd.s32 4294967294, %s772_s17   ;;  %s772_s17 = sphi %s809_s17, %s20_s17   ;;  %s768_s16 = sphi %s807_s16, %s1048_s16   ;;  %s764_s15 = sphi %s805_s15, %s1047_s15   ;;  %s760_s14 = sphi %s803_s14, %s1046_s14   ;;  %s756_s13 = sphi %s801_s13, %s1045_s13   ;;  %s752_s12 = sphi %s799_s12, %s1044_s12  }
   0x8   : > { %p52_p0 = scmp.ne.s32.totalorder %s756_s13, %s752_s12  ;;  %p833_p1 = scmp.eq.s32.totalorder %s467_s18, 0 }
   0x9   : > { %p837_p2 = scmp.eq.s32.totalorder %s467_s18, 1  ;;  %p136_p3 = scmp.eq.s32.totalorder %s468_s19, 1 }
   0xa   : > { %s1029_s20 = scalar_select %p833_p1, 1, 0 }
   0xb   : > { %s1030_s21 = scalar_select %p837_p2, 1, 0 }
   0xc   : > { %p843_p4 = por %p833_p1, %p52_p0  ;;  %p469_p5 = scmp.ge.s32.totalorder %s772_s17, 1 }
   0xd   : > { %p848_p6 = por %p136_p3, %p52_p0  ;;  %p143_p7 = scmp.lt.s32.totalorder %s772_s17, 3 }
   0xe   : > { %s1031_s22 = scalar_select %p843_p4, 1, 0 }
   0xf   : > { %s1032_s23 = scalar_select %p848_p6, 1, 0 }
  0x10   : > { %p853_p8 = pnand %p469_p5, %p143_p7  ;;  %s774_s25 = smov [#allocation5]  }
  0x11   : > { %s157_s26 = sshll.u32 %s774_s25, 4  ;;  %s29_s28 = sadd.s32 1, %s768_s16  ;;  %s158_s26 = int_to_ptr.vmem [resolvable:$true] %s157_s26 }
  0x12   : > { %s1033_s24 = scalar_select %p853_p8, 1, 0 }
  0x13   : > { %p561_p9 = pneg %p853_p8  ;;  %s628_s4 = scalar_lea.hbm %s1022_s1, 4096 }
  0x14   : > { %p629_p12 = scmp.ne.s32.totalorder %s1022_s1, %s628_s4  ;;  %p635_p5 = scmp.lt.u32.totalorder %s628_s4, %s1022_s1 }
  0x15   : > { %p862_p11 = pnand %p561_p9, %p833_p1 }
  0x17   : > { %p630_p13 = pneg %p862_p11 }
  0x19   : > { %p631_p0 = pnand %p630_p13, %p629_p12 }
  0x1b   : > { %p632_p3 = pneg %p631_p0 }
  0x1d   : > { %p637_p7 = pnand %p635_p5, %p632_p3 }
  0x1f   : > { %640 = shalt.err (!%p637_p7)
}
  0x20   : > { %s641_s9 = scalar_lea.vmem %s158_s26, 4096  ;;  %p649_p1 = scmp.lt.s32.totalorder %s158_s26, %s158_s26 }
  0x21   : > { %p642_p9 = scmp.ne.s32.totalorder %s158_s26, %s641_s9  ;;  %p650_p4 = scmp.lt.s32.totalorder %s641_s9, %s641_s9 }
  0x23   : > { %p644_p10 = pnand %p642_p9, %p630_p13  ;;  %p651_p8 = por %p650_p4, %p649_p1 }
  0x25   : > { %p645_p6 = pneg %p644_p10 }
  0x27   : > { %p652_p2 = pnand %p651_p8, %p645_p6 }
  0x29   : > { %655 = shalt.err (!%p652_p2)
}
  0x2a   : > { %s775_s10 = smov 128   ;;  %s776_s11 = smov 8  }
  0x2b   : > { %564 = dma.hbm_to_vmem [thread:$0]  (!%p862_p11), %s1022_s1, 4096, %s158_s26, [#allocation6], %s775_s10, %s775_s10, %s776_s11  }
  0x2c   : > { %p30_p1 = scmp.ge.s32.totalorder %s29_s28, 2  ;;  %s39_s25 = sadd.s32 1, %s760_s14 }
  0x2d   : > { %p46_p2 = scmp.ne.s32.totalorder %s760_s14, %s756_s13  ;;  %p47_p4 = scmp.eq.s32.totalorder %s772_s17, 0 }
  0x2e   : > { %s1050_s28 = smov (%p30_p1, %s29_s28), 0  ;;  %p1036_p8 = scmp.ne.s32.totalorder %s1030_s21, 0 }
  0x2f   : > { %p889_p6 = por %p47_p4, %p46_p2  ;;  %s36_s27 = ssub.s32 %s768_s16, %s1050_s28 }
  0x30   : > { %p895_p10 = por %p1036_p8, %p46_p2  ;;  %p574_p12 = scmp.lt.s32.totalorder %s772_s17, 2 }
  0x31   : > { %p37_p11 = scmp.eq.s32.totalorder %s36_s27, 0  ;;  %s177_s26 = sand.u32 1, %s760_s14  }
  0x32   : > { %s473_s4 = sshll.u32 %s177_s26, 4  ;;  %s485_s6 = sshll.u32 %s768_s16, 8 }
  0x33   : > { %s904_s5 = scalar_select %p37_p11, %s760_s14, %s39_s25  }
  0x34   : > { %s910_s9 = scalar_lea.hbm %s1021_s0, %s485_s6  ;;  %s181_s21 = scalar_lea.vmem [#allocation2], %s473_s4 }
  0x35   : > { %s189_s10 = sshll.u32 %s181_s21, 4  ;;  %p916_p13 = pnand %p574_p12, %p889_p6  ;;  %s912_s10 = int_to_ptr.vmem [resolvable:$true] %s189_s10 }
  0x36   : > { %s178_s18 = scalar_lea.sflag [#allocation3], %s177_s26  ;;  %s656_s19 = scalar_lea.hbm %s910_s9, 256 }
  0x37   : > { %p657_p0 = scmp.ne.s32.totalorder %s910_s9, %s656_s19  ;;  %p658_p3 = pneg %p916_p13 }
  0x38   : > { %s661_s4 = scalar_lea.hbm %s1021_s0, 512  ;;  %p662_p9 = scmp.lt.u32.totalorder %s910_s9, %s1021_s0 }
  0x39   : > { %p659_p5 = pnand %p658_p3, %p657_p0  ;;  %p663_p1 = scmp.lt.u32.totalorder %s661_s4, %s656_s19 }
  0x3a   : > { %p665_p4 = scmp.lt.u32.totalorder %s656_s19, %s910_s9 }
  0x3b   : > { %p660_p7 = pneg %p659_p5  ;;  %p664_p2 = por %p663_p1, %p662_p9 }
  0x3d   : > { %p666_p6 = por %p665_p4, %p664_p2 }
  0x3f   : > { %p667_p8 = pnand %p666_p6, %p660_p7 }
  0x41   : > { %670 = shalt.err (!%p667_p8)
}
  0x42   : > { %s671_s26 = scalar_lea.vmem %s912_s10, 256  ;;  %s777_s7 = smov [#allocation2]  }
  0x43   : > { %p672_p12 = scmp.ne.s32.totalorder %s912_s10, %s671_s26  ;;  %s676_s8 = sshll.u32 %s777_s7, 4  ;;  %s677_s8 = int_to_ptr.vmem [resolvable:$false] %s676_s8 }
  0x44   : > { %s678_s21 = scalar_lea.vmem %s677_s8, 512  ;;  %p679_p5 = scmp.lt.s32.totalorder %s912_s10, %s677_s8 }
  0x45   : > { %p674_p11 = pnand %p672_p12, %p658_p3  ;;  %p680_p9 = scmp.lt.s32.totalorder %s678_s21, %s671_s26 }
  0x47   : > { %p675_p0 = pneg %p674_p11  ;;  %p681_p1 = por %p680_p9, %p679_p5 }
  0x49   : > { %p682_p2 = pnand %p681_p1, %p675_p0 }
  0x4b   : > { %685 = shalt.err (!%p682_p2)
}
  0x4c   : > { %568 = dma.hbm_to_vmem [thread:$0]  (!%p916_p13), %s910_s9, 256, %s912_s10, %s178_s18  }
  0x4d   : > { %p1039_p7 = scmp.ne.s32.totalorder %s1033_s24, 0 }
  0x4e   : > { %s948_s19 = sand.u32 (!%p1039_p7), 1, %s756_s13   ;;  %p1040_p3 = scmp.ne.s32.totalorder (!%p1039_p7), %s1031_s22, 0 }
  0x4f   : > { %198 = sbr.rel (%p1039_p7) target bundleno = 356 (0x164), region = 32  ;;  %s477_s25 = sshll.u32 (!%p1039_p7), %s948_s19, 4 }
  0x50   : > { %s201_s27 = scalar_lea.sflag (!%p1039_p7), [#allocation3], %s948_s19  ;;  %s952_s4 = scalar_lea.vmem (!%p1039_p7), [#allocation2], %s477_s25 }
  0x56   : > { %739 = dma.done.wait (%p1040_p3), %s201_s27, 256  }
  0x57   : > { %741 = vsyncadd (%p1040_p3), %s201_s27, 4294967040  ;;  %p1041_p13 = scmp.ne.s32.totalorder %s1029_s20, 0 }
  0x59   : > { %743 = dma.done.wait (%p1041_p13), [#allocation6], 4096  }
  0x5a   : > { %745 = vsyncadd (%p1041_p13), [#allocation6], 4294963200  ;;  %v255_v0 = vld [vmem:[#allocation5 + $0x80] sm:$0xff]  ;;  %v256_v1 = vld [vmem:[#allocation5 + $0x88] sm:$0xff]  ;;  %s479_s20 = sshll.u32 %s948_s19, 3  ;;  %s482_s9 = sshll.u32 %s764_s15, 7 }
  0x5b   : > { %v239_v2 = vld [vmem:[#allocation5] sm:$0xff]  ;;  %v521_v3 = vpack.c.bf16 %v256_v1, %v255_v0  ;;  %v240_v4 = vld [vmem:[#allocation5 + $0x8] sm:$0xff]  ;;  %v257_v5 = vld [vmem:[#allocation5 + $0x90] sm:$0xff]  ;;  %s233_s10 = scalar_lea.vmem [#allocation7], %s479_s20  ;;  %s972_s6 = scalar_lea.hbm %s1024_s3, %s482_s9 }
  0x5c   : > { %v258_v6 = vld [vmem:[#allocation5 + $0x98] sm:$0xff]  ;;  %v523_v7 = vpack.c.bf16 %v240_v4, %v239_v2  ;;  %v241_v9 = vld [vmem:[#allocation5 + $0x10] sm:$0xff]  ;;  %v259_v11 = vld [vmem:[#allocation5 + $0xa0] sm:$0xff]  ;;  %s364_s11 = sshll.u32 %s233_s10, 4  ;;  %s350_s26 = scalar_lea.sflag [#allocation4], %s948_s19  ;;  %s974_s11 = int_to_ptr.vmem [resolvable:$true] %s364_s11 }
  0x5d   : > { %v525_v8 = vpack.c.bf16 %v258_v6, %v257_v5  ;;  %v242_v10 = vld [vmem:[#allocation5 + $0x18] sm:$0xff]  ;;  %522 = vmatprep.subr.bf16.mxu0 %v521_v3  ;;  %v260_v12 = vld [vmem:[#allocation5 + $0xa8] sm:$0xff]  ;;  %v243_v15 = vld [vmem:[#allocation5 + $0x20] sm:$0xff]  ;;  %s686_s7 = scalar_lea.vmem %s974_s11, 128  ;;  %s778_s15 = smov [#allocation7]  }
  0x5e   : > { %524 = vmatpush3.bf16.msra.mxu0 %v523_v7  ;;  %v527_v13 = vpack.c.bf16 %v242_v10, %v241_v9  ;;  %v529_v14 = vpack.c.bf16 %v260_v12, %v259_v11  ;;  %v244_v16 = vld [vmem:[#allocation5 + $0x28] sm:$0xff]  ;;  %v261_v17 = vld [vmem:[#allocation5 + $0xb0] sm:$0xff]  ;;  %v262_v18 = vld [vmem:[#allocation5 + $0xb8] sm:$0xff]  ;;  %p687_p4 = scmp.ne.s32.totalorder %s974_s11, %s686_s7  ;;  %s690_s8 = sshll.u32 %s778_s15, 4  ;;  %s691_s8 = int_to_ptr.vmem [resolvable:$false] %s690_s8 }
  0x5f   : > { %526 = vmatprep.subr.bf16.mxu0 %v525_v8  ;;  %v531_v19 = vpack.c.bf16 %v244_v16, %v243_v15  ;;  %v533_v20 = vpack.c.bf16 %v262_v18, %v261_v17  ;;  %v245_v21 = vld [vmem:[#allocation5 + $0x30] sm:$0xff]  ;;  %v246_v22 = vld [vmem:[#allocation5 + $0x38] sm:$0xff]  ;;  %v263_v23 = vld [vmem:[#allocation5 + $0xc0] sm:$0xff]  ;;  %s692_s21 = scalar_lea.vmem %s691_s8, 256  ;;  %p693_p12 = scmp.lt.s32.totalorder %s974_s11, %s691_s8 }
  0x60   : > { %v264_v24 = vld [vmem:[#allocation5 + $0xc8] sm:$0xff]  ;;  %v535_v26 = vpack.c.bf16 %v246_v22, %v245_v21  ;;  %v247_v28 = vld [vmem:[#allocation5 + $0x40] sm:$0xff]  ;;  %v265_v30 = vld [vmem:[#allocation5 + $0xd0] sm:$0xff]  ;;  %p688_p6 = pnand %p687_p4, %p895_p10  ;;  %p694_p11 = scmp.lt.s32.totalorder %s692_s21, %s686_s7 }
  0x61   : > { %v238_v25 = vld [vmem:[%s952_s4 + $0x8] sm:$0xff]  ;;  %v537_v27 = vpack.c.bf16 %v264_v24, %v263_v23  ;;  %v249_v34 = vld [vmem:[#allocation5 + $0x50] sm:$0xff]  ;;  %v267_v36 = vld [vmem:[#allocation5 + $0xe0] sm:$0xff] }
  0x62   : > { %528 = vmatpush3.bf16.msra.mxu0 %v527_v13  ;;  %342 = vmatprep.mubr.f32.mxu0 %v238_v25  ;;  %v248_v29 = vld [vmem:[#allocation5 + $0x48] sm:$0xff]  ;;  %v266_v31 = vld [vmem:[#allocation5 + $0xd8] sm:$0xff]  ;;  %v251_v40 = vld [vmem:[#allocation5 + $0x60] sm:$0xff]  ;;  %p689_p8 = pneg %p688_p6  ;;  %p695_p0 = por %p694_p11, %p693_p12 }
  0x63   : > { %530 = vmatprep.subr.bf16.mxu0 %v529_v14  ;;  %v539_v32 = vpack.c.bf16 %v248_v29, %v247_v28  ;;  %v541_v33 = vpack.c.bf16 %v266_v31, %v265_v30  ;;  %v250_v35 = vld [vmem:[#allocation5 + $0x58] sm:$0xff]  ;;  %v268_v37 = vld [vmem:[#allocation5 + $0xe8] sm:$0xff]  ;;  %v269_v42 = vld [vmem:[#allocation5 + $0xf0] sm:$0xff] }
  0x64   : > { %v543_v38 = vpack.c.bf16 %v250_v35, %v249_v34  ;;  %v545_v39 = vpack.c.bf16 %v268_v37, %v267_v36  ;;  %v252_v41 = vld [vmem:[#allocation5 + $0x68] sm:$0xff]  ;;  %v270_v43 = vld [vmem:[#allocation5 + $0xf8] sm:$0xff]  ;;  %v253_v46 = vld [vmem:[#allocation5 + $0x70] sm:$0xff]  ;;  %p696_p5 = pnand %p695_p0, %p689_p8 }
  0x65   : > { %v547_v44 = vpack.c.bf16 %v252_v41, %v251_v40  ;;  %v549_v45 = vpack.c.bf16 %v270_v43, %v269_v42  ;;  %v254_v47 = vld [vmem:[#allocation5 + $0x78] sm:$0xff]  ;;  %v237_v49 = vld [vmem:[%s952_s4] sm:$0xff] }
  0x66   : > { %532 = vmatpush3.bf16.msra.mxu0 %v531_v19  ;;  %v551_v48 = vpack.c.bf16 %v254_v47, %v253_v46  ;;  %v480_v51 = vld [vmem:[%s1023_s2] ss:$0 sm:$0xff] }
  0x67   : > { %534 = vmatprep.subr.bf16.mxu0 %v533_v20 }
  0x6a   : > { %536 = vmatpush3.bf16.msra.mxu0 %v535_v26 }
  0x6b   : > { %538 = vmatprep.subr.bf16.mxu0 %v537_v27 }
  0x6e   : > { %540 = vmatpush3.bf16.msra.mxu0 %v539_v32 }
  0x6f   : > { %542 = vmatprep.subr.bf16.mxu0 %v541_v33 }
  0x72   : > { %544 = vmatpush3.bf16.msra.mxu0 %v543_v38 }
  0x73   : > { %546 = vmatprep.subr.bf16.mxu0 %v545_v39 }
  0x76   : > { %548 = vmatpush3.bf16.msra.mxu0 %v547_v44 }
  0x77   : > { %550 = vmatprep.subr.bf16.mxu0 %v549_v45 }
  0x7a   : > { %552 = vmatpush3.bf16.msra.mxu0 %v551_v48 }
  0x7d   : > { %343 = vmatmul.mubr.f32.vlgmr.msra.gmra.mrb[0].mxu0 %v237_v49 }
 0x150   : > { %v518_v50 = vpop.f32.mrb[0].mxu0 }
 0x151   : > { %v519_v52 = vpop.f32.mrb[1].mxu0 }
 0x152   : > { %v520_v53 = vadd.f32 %v519_v52, %v518_v50 }
 0x154   : > { %v345_v54 = vadd.f32 %v520_v53, %v480_v51 }
 0x156   : > { %348 = vst [vmem:[%s233_s10] sm:$0xff] %v345_v54 }
 0x157   : > { %699 = shalt.err (!%p696_p5)
}
 0x158   : > { %s700_s19 = scalar_lea.hbm %s972_s6, 128  ;;  %s704_s4 = scalar_lea.hbm %s1024_s3, 256 }
 0x159   : > { %p701_p9 = scmp.ne.s32.totalorder %s972_s6, %s700_s19  ;;  %p705_p7 = scmp.lt.u32.totalorder %s972_s6, %s1024_s3 }
 0x15a   : > { %p706_p3 = scmp.lt.u32.totalorder %s704_s4, %s700_s19  ;;  %p708_p4 = scmp.lt.u32.totalorder %s700_s19, %s972_s6 }
 0x15b   : > { %p702_p1 = pnand %p701_p9, %p895_p10 }
 0x15c   : > { %p707_p13 = por %p706_p3, %p705_p7 }
 0x15d   : > { %p703_p2 = pneg %p702_p1 }
 0x15e   : > { %p709_p6 = por %p708_p4, %p707_p13 }
 0x160   : > { %p710_p8 = pnand %p709_p6, %p703_p2 }
 0x162   : > { %713 = shalt.err (!%p710_p8)
}
 0x163   : > { %559 = dma.vmem_to_hbm [thread:$0]  (%p895_p10), %s974_s11, 128, %s972_s6, %s350_s26  }
 0x164 PF: > { %s376_s24 = sand.u32 1, %s752_s12   ;;  %p1042_p12 = scmp.ne.s32.totalorder %s1032_s23, 0 }
 0x165   : > { %p1043_p11 = scmp.ge.s32.totalorder %s772_s17, 2  ;;  %s377_s9 = scalar_lea.sflag [#allocation4], %s376_s24 }
 0x167   : > { %p570_p0 = pnand %p1043_p11, %p1042_p12 }
 0x169   : > { %747 = dma.done.wait (!%p570_p0), %s377_s9, 128  }
 0x16a   : > { %749 = vsyncadd (!%p570_p0), %s377_s9, 4294967168  ;;  %s20_s17 = sadd.s32 1, %s772_s17   ;;  %s1044_s12 = smov %s756_s13 }
 0x16b   : > { %p17_p5 = scmp.ge.s32.totalorder %s20_s17, 4   ;;  %s1045_s13 = smov %s760_s14 }
 0x16c   : > { %s1046_s14 = smov %s904_s5  ;;  %s1047_s15 = smov %s768_s16 }
 0x16d   : > { %s1048_s16 = smov %s1050_s28  ;;  %19 = sbr.rel (!%p17_p5) target bundleno = 7 (0x7), region = 85 }
 0x174   :  { %382 = vsyncpa [#allocation3], 1 }
 0x175   :  { %384 = vsyncpa [#allocation3 + $0x1], 1 }
 0x176   :  { %385 = vsyncpa [#allocation6], 1 }
 0x177   :  { %386 = vsyncpa [#allocation4], 1 }
 0x178   :  { %388 = vsyncpa [#allocation4 + $0x1], 1 }

</bundles_post_ra>
